<compile_context>
chip_gen: v7x
topology: tpu7x:2x2x1
jax: 0.10.0
libtpu: 0.0.40
codegen_flags: <defaults>
</compile_context>

<pallas_src>
import functools
import math

import jax
import jax.numpy as jnp
from jax import lax
from jax.experimental import pallas as pl
from jax.experimental.pallas import tpu as pltpu


def _uniform_i32(n_u32):
    """lowbias32 hash of a uint32 counter -> ~uniform int32 value."""
    h = n_u32
    h = h ^ (h >> 16)
    h = h * jnp.uint32(0x7FEB352D)
    h = h ^ (h >> 15)
    h = h * jnp.uint32(0x846CA68B)
    h = h ^ (h >> 16)
    return h.astype(jnp.int32)          # same-width convert, modular (bit view)


def _latent_uer_kernel(seed_ref, x_ref, o_ref, *,
                       num_bits_whole, total_bits, hidden, chunk,
                       thr_even, thr_odd):
    """normalize -> binarize -> UER-randomize one batch tile.

    Writes the final element-major layout out[b, h*T + t] directly: a single,
    lane-dense (tb, H*T) float32 store per tile (one HBM pass for the output).
    """
    T = total_bits
    W = num_bits_whole
    H = hidden
    tb = x_ref.shape[0]

    # ---- 1) row-wise normalization (unbiased variance, no eps: as in reference)
    x = x_ref[...].astype(jnp.float32)                     # (tb, H)
    mean = jnp.mean(x, axis=1, keepdims=True)
    xc = x - mean
    var = jnp.sum(xc * xc, axis=1, keepdims=True) * (1.0 / (H - 1))
    norm = xc * lax.rsqrt(var)                             # (tb, H)

    neg = norm < 0.0                                       # sign bit
    absv = jnp.abs(norm)

    # ---- globally unique per-element counters (independent of tile size)
    row = pl.program_id(0) * tb + lax.broadcasted_iota(jnp.int32, (tb, H), 0)
    col = lax.broadcasted_iota(jnp.int32, (tb, H), 1)
    # TODO(synk): the reference draws host-side np.random.uniform; here the
    # uniforms come from a stateless counter hash keyed by `seed` (same Bernoulli
    # distribution, different bit stream).
    base = ((row * H + col) * T).astype(jnp.uint32) + \
        seed_ref[0].astype(jnp.uint32) * jnp.uint32(0x9E3779B9)     # (tb, H)
    col_odd = (col & 1) == 1                               # only used when T is odd

    # ---- 2+3) per bit-slot planes, interleaved per H-chunk into element-major
    #           order and stored lane-dense.  Chunking bounds the lane-padded
    #           (tb, chunk, T) interleave intermediate in VMEM.
    for c0 in range(0, H, chunk):
        c1 = min(c0 + chunk, H)
        planes = []
        for t in range(T):
            # bit value of slot t
            if t == 0:
                is_one = neg[:, c0:c1]                     # sign slot
            else:
                # whole bits: i = t-1, scale 2^-i ; frac bits: i = t-W, scale 2^i
                scale = 2.0 ** (1 - t) if t <= W else 2.0 ** (t - W)
                # |v|*scale >= 0, so int truncation == floor. (Can overflow int32
                # only if 2^F * sqrt(H) approaches 2^31 -- not the case here.)
                y = (absv[:, c0:c1] * scale).astype(jnp.int32)
                is_one = (y & 1) == 1
            # Bernoulli thresholds for this slot: parity of c = h*T + t.
            if T % 2 == 0:
                t1, t0 = thr_odd if (t & 1) else thr_even  # Python constants
                thr = jnp.where(is_one, jnp.int32(t1), jnp.int32(t0))
            else:
                odd = jnp.logical_not(col_odd[:, c0:c1]) if (t & 1) \
                    else col_odd[:, c0:c1]
                thr = jnp.where(
                    is_one,
                    jnp.where(odd, jnp.int32(thr_odd[0]), jnp.int32(thr_even[0])),
                    jnp.where(odd, jnp.int32(thr_odd[1]), jnp.int32(thr_even[1])))
            # randomized response: P(hash < thr) == flip-to-1 probability
            u = _uniform_i32(base[:, c0:c1] + jnp.uint32(t))
            planes.append((u < thr).astype(o_ref.dtype))
        # interleave the T planes into element-major order: out[:, h*T + t].
        # (If this minor-dim relayout ever becomes a Mosaic bottleneck, the
        #  fallback is a (B, H, T) out_shape + free row-major reshape in XLA.)
        blk = jnp.stack(planes, axis=-1).reshape(tb, (c1 - c0) * T)
        o_ref[:, c0 * T:c1 * T] = blk


class LatentModulePallas:
    """JAX/Pallas equivalent of the PyTorch LatentModule (no learnable params)."""

    def __init__(self, num_bits_whole, num_bits_fraction, epsilon,
                 flatten_hidden_size, alpha):
        self.num_bits_whole = num_bits_whole
        self.num_bits_fraction = num_bits_fraction
        self.epsilon = epsilon
        self.flatten_hidden_size = flatten_hidden_size
        self.alpha = alpha
        self.total_bits = num_bits_whole + num_bits_fraction + 1
        self.sensitivity = self.total_bits * flatten_hidden_size

        self.even_1to1 = alpha / (1 + alpha)
        self.even_0to1 = 1 / (1 + alpha * math.exp(epsilon / self.sensitivity))
        self.odd_1to1 = 1 / (1 + alpha ** 3)
        self.odd_0to1 = 1 / (1 + alpha * math.exp(epsilon / self.sensitivity))

        # Signed-int32 thresholds: P(int32_hash < thr) == p (exact to 2^-32).
        self._thr_even = (self._thr_i32(self.even_1to1),
                          self._thr_i32(self.even_0to1))
        self._thr_odd = (self._thr_i32(self.odd_1to1),
                         self._thr_i32(self.odd_0to1))

    @staticmethod
    def _thr_i32(p):
        t = int(round(p * 4294967296.0)) - 2147483648
        return max(-2147483648, min(2147483647, t))

    @staticmethod
    def _pick_batch_tile(B, H, T, chunk):
        if B <= 8:
            return B
        # f32 bytes per batch row that are actually live in VMEM:
        #   2*H        input block (double-buffered)
        #   2*H*T      output block (double-buffered)
        #   ~3*T*ch    per-slot planes + compare temporaries (chunk-sized)
        #   128*ch     lane-padded (tb, ch, T) interleave intermediate (T < 128)
        #   ~8*H       norm/absv/counter temporaries
        per_row = 4 * (2 * H + 2 * H * T + 3 * T * chunk + 128 * chunk + 8 * H)
        budget = 24 * 1024 * 1024          # target peak; fits v7x's 64 MiB / TC
        tb = (budget // per_row) // 8 * 8
        return int(max(8, min(B, tb)))

    def __call__(self, x, seed):
        B, H = x.shape
        T = self.total_bits
        L = H * T
        assert H > 1, "row normalization needs at least two hidden features"

        chunk = H if H <= 512 else 512
        tb = self._pick_batch_tile(B, H, T, chunk)
        nb = pl.cdiv(B, tb)

        kernel = functools.partial(
            _latent_uer_kernel,
            num_bits_whole=self.num_bits_whole,
            total_bits=T, hidden=H, chunk=chunk,
            thr_even=self._thr_even, thr_odd=self._thr_odd)

        seed_arr = jnp.asarray([seed], dtype=jnp.int32)

        return pl.pallas_call(
            kernel,
            out_shape=jax.ShapeDtypeStruct((B, L), jnp.float32),
            grid_spec=pltpu.PrefetchScalarGridSpec(
                num_scalar_prefetch=1,
                grid=(nb,),
                in_specs=[pl.BlockSpec((tb, H), lambda i, seed: (i, 0))],
                out_specs=pl.BlockSpec((tb, L), lambda i, seed: (i, 0)),
            ),
            compiler_params=pltpu.CompilerParams(
                # batch tiles are independent; on v7x this lets the two TCs
                # split the grid (pltpu.CORE_PARALLEL would force it explicitly).
                dimension_semantics=("parallel",),
                vmem_limit_bytes=48 * 1024 * 1024),
        )(seed_arr, x)


if __name__ == "__main__":
    # Small shapes consistent with the module: batch=2, hidden=32,
    # 3 whole bits + 4 fraction bits + sign => total_bits = 8, L = 256.
    B, H = 2, 32
    num_bits_whole, num_bits_fraction = 3, 4

    mod = LatentModulePallas(num_bits_whole, num_bits_fraction,
                             epsilon=1.0, flatten_hidden_size=H, alpha=2.0)

    key = jax.random.PRNGKey(0)
    x = jax.random.normal(key, (B, H), dtype=jnp.float32) * 2.0

    out = mod(x, seed=1234)
    out = jax.block_until_ready(out)

    assert out.shape == (B, H * mod.total_bits), out.shape
    assert out.dtype == jnp.float32
    assert bool(jnp.all((out == 0.0) | (out == 1.0)))
    print("KERNEL_OK")
</pallas_src>

<mosaic_0001>
module attributes {stable_mosaic.version = 11 : i64} {
  func.func @_latent_uer_kernel(%arg0: i32, %arg1: memref<1xi32, #tpu.memory_space<smem>>, %arg2: memref<2x32xf32, #tpu.memory_space<vmem>>, %arg3: memref<2x256xf32, #tpu.memory_space<vmem>>) attributes {dimension_semantics = [#tpu.dimension_semantics<parallel>], iteration_bounds = array<i64: 1>, scalar_prefetch = 1 : i64, scratch_operands = 0 : i64, tpu.core_type = #tpu.core_type<tc>, window_params = [{transform_indices = @transform_0, window_bounds = array<i64: 2, 32>}, {transform_indices = @transform_1, window_bounds = array<i64: 2, 256>}]} {
    %c0 = arith.constant 0 : index
    %c0_0 = arith.constant 0 : index
    %0 = vector.load %arg2[%c0, %c0_0] : memref<2x32xf32, #tpu.memory_space<vmem>>, vector<2x32xf32>
    %cst = arith.constant dense<0.000000e+00> : vector<2xf32>
    %1 = vector.multi_reduction <add>, %0, %cst [1] : vector<2x32xf32> to vector<2xf32>
    %2 = vector.shape_cast %1 : vector<2xf32> to vector<2x1xf32>
    %cst_1 = arith.constant 3.200000e+01 : f32
    %3 = vector.broadcast %cst_1 : f32 to vector<2x1xf32>
    %4 = arith.divf %2, %3 : vector<2x1xf32>
    %5 = vector.broadcast %4 : vector<2x1xf32> to vector<2x32xf32>
    %6 = arith.subf %0, %5 : vector<2x32xf32>
    %7 = arith.mulf %6, %6 : vector<2x32xf32>
    %cst_2 = arith.constant dense<0.000000e+00> : vector<2xf32>
    %8 = vector.multi_reduction <add>, %7, %cst_2 [1] : vector<2x32xf32> to vector<2xf32>
    %9 = vector.shape_cast %8 : vector<2xf32> to vector<2x1xf32>
    %cst_3 = arith.constant 0.0322580636 : f32
    %10 = vector.broadcast %cst_3 : f32 to vector<2x1xf32>
    %11 = arith.mulf %9, %10 : vector<2x1xf32>
    %12 = math.rsqrt %11 : vector<2x1xf32>
    %13 = vector.broadcast %12 : vector<2x1xf32> to vector<2x32xf32>
    %14 = arith.mulf %6, %13 : vector<2x32xf32>
    %cst_4 = arith.constant 0.000000e+00 : f32
    %15 = vector.broadcast %cst_4 : f32 to vector<2x32xf32>
    %16 = arith.cmpf olt, %14, %15 : vector<2x32xf32>
    %17 = math.absf %14 : vector<2x32xf32>
    %c2_i32 = arith.constant 2 : i32
    %18 = arith.muli %arg0, %c2_i32 : i32
    %19 = tpu.iota {dimensions = array<i32: 0>} : vector<2x32xi32>
    %20 = vector.broadcast %18 : i32 to vector<2x32xi32>
    %21 = arith.addi %20, %19 : vector<2x32xi32>
    %22 = tpu.iota {dimensions = array<i32: 1>} : vector<2x32xi32>
    %c32_i32 = arith.constant 32 : i32
    %23 = vector.broadcast %c32_i32 : i32 to vector<2x32xi32>
    %24 = arith.muli %21, %23 : vector<2x32xi32>
    %25 = arith.addi %24, %22 : vector<2x32xi32>
    %c8_i32 = arith.constant 8 : i32
    %26 = vector.broadcast %c8_i32 : i32 to vector<2x32xi32>
    %27 = arith.muli %25, %26 : vector<2x32xi32>
    %c0_5 = arith.constant 0 : index
    %28 = memref.load %arg1[%c0_5] : memref<1xi32, #tpu.memory_space<smem>>
    %c-1640531527_i32 = arith.constant -1640531527 : i32
    %29 = arith.muli %28, %c-1640531527_i32 : i32
    %30 = vector.broadcast %29 : i32 to vector<2x32xi32>
    %31 = arith.addi %27, %30 : vector<2x32xi32>
    %c715827883_i32 = arith.constant 715827883 : i32
    %c-719553722_i32 = arith.constant -719553722 : i32
    %32 = vector.broadcast %c715827883_i32 : i32 to vector<2x32xi32>
    %33 = vector.broadcast %c-719553722_i32 : i32 to vector<2x32xi32>
    %34 = arith.select %16, %32, %33 : vector<2x32xi1>, vector<2x32xi32>
    %c0_i32 = arith.constant 0 : i32
    %35 = vector.broadcast %c0_i32 : i32 to vector<2x32xi32>
    %36 = arith.addi %31, %35 : vector<2x32xi32>
    %c16_i32 = arith.constant 16 : i32
    %37 = vector.broadcast %c16_i32 : i32 to vector<2x32xi32>
    %38 = arith.shrui %36, %37 : vector<2x32xi32>
    %39 = arith.xori %36, %38 : vector<2x32xi32>
    %c2146121005_i32 = arith.constant 2146121005 : i32
    %40 = vector.broadcast %c2146121005_i32 : i32 to vector<2x32xi32>
    %41 = arith.muli %39, %40 : vector<2x32xi32>
    %c15_i32 = arith.constant 15 : i32
    %42 = vector.broadcast %c15_i32 : i32 to vector<2x32xi32>
    %43 = arith.shrui %41, %42 : vector<2x32xi32>
    %44 = arith.xori %41, %43 : vector<2x32xi32>
    %c-2073254261_i32 = arith.constant -2073254261 : i32
    %45 = vector.broadcast %c-2073254261_i32 : i32 to vector<2x32xi32>
    %46 = arith.muli %44, %45 : vector<2x32xi32>
    %c16_i32_6 = arith.constant 16 : i32
    %47 = vector.broadcast %c16_i32_6 : i32 to vector<2x32xi32>
    %48 = arith.shrui %46, %47 : vector<2x32xi32>
    %49 = arith.xori %46, %48 : vector<2x32xi32>
    %50 = arith.cmpi slt, %49, %34 : vector<2x32xi32>
    %51 = arith.extui %50 : vector<2x32xi1> to vector<2x32xi32>
    %52 = arith.sitofp %51 : vector<2x32xi32> to vector<2x32xf32>
    %cst_7 = arith.constant 1.000000e+00 : f32
    %53 = vector.broadcast %cst_7 : f32 to vector<2x32xf32>
    %54 = arith.mulf %17, %53 : vector<2x32xf32>
    %55 = arith.fptosi %54 : vector<2x32xf32> to vector<2x32xi32>
    %c1_i32 = arith.constant 1 : i32
    %56 = vector.broadcast %c1_i32 : i32 to vector<2x32xi32>
    %57 = arith.andi %55, %56 : vector<2x32xi32>
    %c1_i32_8 = arith.constant 1 : i32
    %58 = vector.broadcast %c1_i32_8 : i32 to vector<2x32xi32>
    %59 = arith.cmpi eq, %57, %58 : vector<2x32xi32>
    %c-1670265060_i32 = arith.constant -1670265060 : i32
    %c-719553722_i32_9 = arith.constant -719553722 : i32
    %60 = vector.broadcast %c-1670265060_i32 : i32 to vector<2x32xi32>
    %61 = vector.broadcast %c-719553722_i32_9 : i32 to vector<2x32xi32>
    %62 = arith.select %59, %60, %61 : vector<2x32xi1>, vector<2x32xi32>
    %c1_i32_10 = arith.constant 1 : i32
    %63 = vector.broadcast %c1_i32_10 : i32 to vector<2x32xi32>
    %64 = arith.addi %31, %63 : vector<2x32xi32>
    %c16_i32_11 = arith.constant 16 : i32
    %65 = vector.broadcast %c16_i32_11 : i32 to vector<2x32xi32>
    %66 = arith.shrui %64, %65 : vector<2x32xi32>
    %67 = arith.xori %64, %66 : vector<2x32xi32>
    %c2146121005_i32_12 = arith.constant 2146121005 : i32
    %68 = vector.broadcast %c2146121005_i32_12 : i32 to vector<2x32xi32>
    %69 = arith.muli %67, %68 : vector<2x32xi32>
    %c15_i32_13 = arith.constant 15 : i32
    %70 = vector.broadcast %c15_i32_13 : i32 to vector<2x32xi32>
    %71 = arith.shrui %69, %70 : vector<2x32xi32>
    %72 = arith.xori %69, %71 : vector<2x32xi32>
    %c-2073254261_i32_14 = arith.constant -2073254261 : i32
    %73 = vector.broadcast %c-2073254261_i32_14 : i32 to vector<2x32xi32>
    %74 = arith.muli %72, %73 : vector<2x32xi32>
    %c16_i32_15 = arith.constant 16 : i32
    %75 = vector.broadcast %c16_i32_15 : i32 to vector<2x32xi32>
    %76 = arith.shrui %74, %75 : vector<2x32xi32>
    %77 = arith.xori %74, %76 : vector<2x32xi32>
    %78 = arith.cmpi slt, %77, %62 : vector<2x32xi32>
    %79 = arith.extui %78 : vector<2x32xi1> to vector<2x32xi32>
    %80 = arith.sitofp %79 : vector<2x32xi32> to vector<2x32xf32>
    %cst_16 = arith.constant 5.000000e-01 : f32
    %81 = vector.broadcast %cst_16 : f32 to vector<2x32xf32>
    %82 = arith.mulf %17, %81 : vector<2x32xf32>
    %83 = arith.fptosi %82 : vector<2x32xf32> to vector<2x32xi32>
    %c1_i32_17 = arith.constant 1 : i32
    %84 = vector.broadcast %c1_i32_17 : i32 to vector<2x32xi32>
    %85 = arith.andi %83, %84 : vector<2x32xi32>
    %c1_i32_18 = arith.constant 1 : i32
    %86 = vector.broadcast %c1_i32_18 : i32 to vector<2x32xi32>
    %87 = arith.cmpi eq, %85, %86 : vector<2x32xi32>
    %c715827883_i32_19 = arith.constant 715827883 : i32
    %c-719553722_i32_20 = arith.constant -719553722 : i32
    %88 = vector.broadcast %c715827883_i32_19 : i32 to vector<2x32xi32>
    %89 = vector.broadcast %c-719553722_i32_20 : i32 to vector<2x32xi32>
    %90 = arith.select %87, %88, %89 : vector<2x32xi1>, vector<2x32xi32>
    %c2_i32_21 = arith.constant 2 : i32
    %91 = vector.broadcast %c2_i32_21 : i32 to vector<2x32xi32>
    %92 = arith.addi %31, %91 : vector<2x32xi32>
    %c16_i32_22 = arith.constant 16 : i32
    %93 = vector.broadcast %c16_i32_22 : i32 to vector<2x32xi32>
    %94 = arith.shrui %92, %93 : vector<2x32xi32>
    %95 = arith.xori %92, %94 : vector<2x32xi32>
    %c2146121005_i32_23 = arith.constant 2146121005 : i32
    %96 = vector.broadcast %c2146121005_i32_23 : i32 to vector<2x32xi32>
    %97 = arith.muli %95, %96 : vector<2x32xi32>
    %c15_i32_24 = arith.constant 15 : i32
    %98 = vector.broadcast %c15_i32_24 : i32 to vector<2x32xi32>
    %99 = arith.shrui %97, %98 : vector<2x32xi32>
    %100 = arith.xori %97, %99 : vector<2x32xi32>
    %c-2073254261_i32_25 = arith.constant -2073254261 : i32
    %101 = vector.broadcast %c-2073254261_i32_25 : i32 to vector<2x32xi32>
    %102 = arith.muli %100, %101 : vector<2x32xi32>
    %c16_i32_26 = arith.constant 16 : i32
    %103 = vector.broadcast %c16_i32_26 : i32 to vector<2x32xi32>
    %104 = arith.shrui %102, %103 : vector<2x32xi32>
    %105 = arith.xori %102, %104 : vector<2x32xi32>
    %106 = arith.cmpi slt, %105, %90 : vector<2x32xi32>
    %107 = arith.extui %106 : vector<2x32xi1> to vector<2x32xi32>
    %108 = arith.sitofp %107 : vector<2x32xi32> to vector<2x32xf32>
    %cst_27 = arith.constant 2.500000e-01 : f32
    %109 = vector.broadcast %cst_27 : f32 to vector<2x32xf32>
    %110 = arith.mulf %17, %109 : vector<2x32xf32>
    %111 = arith.fptosi %110 : vector<2x32xf32> to vector<2x32xi32>
    %c1_i32_28 = arith.constant 1 : i32
    %112 = vector.broadcast %c1_i32_28 : i32 to vector<2x32xi32>
    %113 = arith.andi %111, %112 : vector<2x32xi32>
    %c1_i32_29 = arith.constant 1 : i32
    %114 = vector.broadcast %c1_i32_29 : i32 to vector<2x32xi32>
    %115 = arith.cmpi eq, %113, %114 : vector<2x32xi32>
    %c-1670265060_i32_30 = arith.constant -1670265060 : i32
    %c-719553722_i32_31 = arith.constant -719553722 : i32
    %116 = vector.broadcast %c-1670265060_i32_30 : i32 to vector<2x32xi32>
    %117 = vector.broadcast %c-719553722_i32_31 : i32 to vector<2x32xi32>
    %118 = arith.select %115, %116, %117 : vector<2x32xi1>, vector<2x32xi32>
    %c3_i32 = arith.constant 3 : i32
    %119 = vector.broadcast %c3_i32 : i32 to vector<2x32xi32>
    %120 = arith.addi %31, %119 : vector<2x32xi32>
    %c16_i32_32 = arith.constant 16 : i32
    %121 = vector.broadcast %c16_i32_32 : i32 to vector<2x32xi32>
    %122 = arith.shrui %120, %121 : vector<2x32xi32>
    %123 = arith.xori %120, %122 : vector<2x32xi32>
    %c2146121005_i32_33 = arith.constant 2146121005 : i32
    %124 = vector.broadcast %c2146121005_i32_33 : i32 to vector<2x32xi32>
    %125 = arith.muli %123, %124 : vector<2x32xi32>
    %c15_i32_34 = arith.constant 15 : i32
    %126 = vector.broadcast %c15_i32_34 : i32 to vector<2x32xi32>
    %127 = arith.shrui %125, %126 : vector<2x32xi32>
    %128 = arith.xori %125, %127 : vector<2x32xi32>
    %c-2073254261_i32_35 = arith.constant -2073254261 : i32
    %129 = vector.broadcast %c-2073254261_i32_35 : i32 to vector<2x32xi32>
    %130 = arith.muli %128, %129 : vector<2x32xi32>
    %c16_i32_36 = arith.constant 16 : i32
    %131 = vector.broadcast %c16_i32_36 : i32 to vector<2x32xi32>
    %132 = arith.shrui %130, %131 : vector<2x32xi32>
    %133 = arith.xori %130, %132 : vector<2x32xi32>
    %134 = arith.cmpi slt, %133, %118 : vector<2x32xi32>
    %135 = arith.extui %134 : vector<2x32xi1> to vector<2x32xi32>
    %136 = arith.sitofp %135 : vector<2x32xi32> to vector<2x32xf32>
    %cst_37 = arith.constant 2.000000e+00 : f32
    %137 = vector.broadcast %cst_37 : f32 to vector<2x32xf32>
    %138 = arith.mulf %17, %137 : vector<2x32xf32>
    %139 = arith.fptosi %138 : vector<2x32xf32> to vector<2x32xi32>
    %c1_i32_38 = arith.constant 1 : i32
    %140 = vector.broadcast %c1_i32_38 : i32 to vector<2x32xi32>
    %141 = arith.andi %139, %140 : vector<2x32xi32>
    %c1_i32_39 = arith.constant 1 : i32
    %142 = vector.broadcast %c1_i32_39 : i32 to vector<2x32xi32>
    %143 = arith.cmpi eq, %141, %142 : vector<2x32xi32>
    %c715827883_i32_40 = arith.constant 715827883 : i32
    %c-719553722_i32_41 = arith.constant -719553722 : i32
    %144 = vector.broadcast %c715827883_i32_40 : i32 to vector<2x32xi32>
    %145 = vector.broadcast %c-719553722_i32_41 : i32 to vector<2x32xi32>
    %146 = arith.select %143, %144, %145 : vector<2x32xi1>, vector<2x32xi32>
    %c4_i32 = arith.constant 4 : i32
    %147 = vector.broadcast %c4_i32 : i32 to vector<2x32xi32>
    %148 = arith.addi %31, %147 : vector<2x32xi32>
    %c16_i32_42 = arith.constant 16 : i32
    %149 = vector.broadcast %c16_i32_42 : i32 to vector<2x32xi32>
    %150 = arith.shrui %148, %149 : vector<2x32xi32>
    %151 = arith.xori %148, %150 : vector<2x32xi32>
    %c2146121005_i32_43 = arith.constant 2146121005 : i32
    %152 = vector.broadcast %c2146121005_i32_43 : i32 to vector<2x32xi32>
    %153 = arith.muli %151, %152 : vector<2x32xi32>
    %c15_i32_44 = arith.constant 15 : i32
    %154 = vector.broadcast %c15_i32_44 : i32 to vector<2x32xi32>
    %155 = arith.shrui %153, %154 : vector<2x32xi32>
    %156 = arith.xori %153, %155 : vector<2x32xi32>
    %c-2073254261_i32_45 = arith.constant -2073254261 : i32
    %157 = vector.broadcast %c-2073254261_i32_45 : i32 to vector<2x32xi32>
    %158 = arith.muli %156, %157 : vector<2x32xi32>
    %c16_i32_46 = arith.constant 16 : i32
    %159 = vector.broadcast %c16_i32_46 : i32 to vector<2x32xi32>
    %160 = arith.shrui %158, %159 : vector<2x32xi32>
    %161 = arith.xori %158, %160 : vector<2x32xi32>
    %162 = arith.cmpi slt, %161, %146 : vector<2x32xi32>
    %163 = arith.extui %162 : vector<2x32xi1> to vector<2x32xi32>
    %164 = arith.sitofp %163 : vector<2x32xi32> to vector<2x32xf32>
    %cst_47 = arith.constant 4.000000e+00 : f32
    %165 = vector.broadcast %cst_47 : f32 to vector<2x32xf32>
    %166 = arith.mulf %17, %165 : vector<2x32xf32>
    %167 = arith.fptosi %166 : vector<2x32xf32> to vector<2x32xi32>
    %c1_i32_48 = arith.constant 1 : i32
    %168 = vector.broadcast %c1_i32_48 : i32 to vector<2x32xi32>
    %169 = arith.andi %167, %168 : vector<2x32xi32>
    %c1_i32_49 = arith.constant 1 : i32
    %170 = vector.broadcast %c1_i32_49 : i32 to vector<2x32xi32>
    %171 = arith.cmpi eq, %169, %170 : vector<2x32xi32>
    %c-1670265060_i32_50 = arith.constant -1670265060 : i32
    %c-719553722_i32_51 = arith.constant -719553722 : i32
    %172 = vector.broadcast %c-1670265060_i32_50 : i32 to vector<2x32xi32>
    %173 = vector.broadcast %c-719553722_i32_51 : i32 to vector<2x32xi32>
    %174 = arith.select %171, %172, %173 : vector<2x32xi1>, vector<2x32xi32>
    %c5_i32 = arith.constant 5 : i32
    %175 = vector.broadcast %c5_i32 : i32 to vector<2x32xi32>
    %176 = arith.addi %31, %175 : vector<2x32xi32>
    %c16_i32_52 = arith.constant 16 : i32
    %177 = vector.broadcast %c16_i32_52 : i32 to vector<2x32xi32>
    %178 = arith.shrui %176, %177 : vector<2x32xi32>
    %179 = arith.xori %176, %178 : vector<2x32xi32>
    %c2146121005_i32_53 = arith.constant 2146121005 : i32
    %180 = vector.broadcast %c2146121005_i32_53 : i32 to vector<2x32xi32>
    %181 = arith.muli %179, %180 : vector<2x32xi32>
    %c15_i32_54 = arith.constant 15 : i32
    %182 = vector.broadcast %c15_i32_54 : i32 to vector<2x32xi32>
    %183 = arith.shrui %181, %182 : vector<2x32xi32>
    %184 = arith.xori %181, %183 : vector<2x32xi32>
    %c-2073254261_i32_55 = arith.constant -2073254261 : i32
    %185 = vector.broadcast %c-2073254261_i32_55 : i32 to vector<2x32xi32>
    %186 = arith.muli %184, %185 : vector<2x32xi32>
    %c16_i32_56 = arith.constant 16 : i32
    %187 = vector.broadcast %c16_i32_56 : i32 to vector<2x32xi32>
    %188 = arith.shrui %186, %187 : vector<2x32xi32>
    %189 = arith.xori %186, %188 : vector<2x32xi32>
    %190 = arith.cmpi slt, %189, %174 : vector<2x32xi32>
    %191 = arith.extui %190 : vector<2x32xi1> to vector<2x32xi32>
    %192 = arith.sitofp %191 : vector<2x32xi32> to vector<2x32xf32>
    %cst_57 = arith.constant 8.000000e+00 : f32
    %193 = vector.broadcast %cst_57 : f32 to vector<2x32xf32>
    %194 = arith.mulf %17, %193 : vector<2x32xf32>
    %195 = arith.fptosi %194 : vector<2x32xf32> to vector<2x32xi32>
    %c1_i32_58 = arith.constant 1 : i32
    %196 = vector.broadcast %c1_i32_58 : i32 to vector<2x32xi32>
    %197 = arith.andi %195, %196 : vector<2x32xi32>
    %c1_i32_59 = arith.constant 1 : i32
    %198 = vector.broadcast %c1_i32_59 : i32 to vector<2x32xi32>
    %199 = arith.cmpi eq, %197, %198 : vector<2x32xi32>
    %c715827883_i32_60 = arith.constant 715827883 : i32
    %c-719553722_i32_61 = arith.constant -719553722 : i32
    %200 = vector.broadcast %c715827883_i32_60 : i32 to vector<2x32xi32>
    %201 = vector.broadcast %c-719553722_i32_61 : i32 to vector<2x32xi32>
    %202 = arith.select %199, %200, %201 : vector<2x32xi1>, vector<2x32xi32>
    %c6_i32 = arith.constant 6 : i32
    %203 = vector.broadcast %c6_i32 : i32 to vector<2x32xi32>
    %204 = arith.addi %31, %203 : vector<2x32xi32>
    %c16_i32_62 = arith.constant 16 : i32
    %205 = vector.broadcast %c16_i32_62 : i32 to vector<2x32xi32>
    %206 = arith.shrui %204, %205 : vector<2x32xi32>
    %207 = arith.xori %204, %206 : vector<2x32xi32>
    %c2146121005_i32_63 = arith.constant 2146121005 : i32
    %208 = vector.broadcast %c2146121005_i32_63 : i32 to vector<2x32xi32>
    %209 = arith.muli %207, %208 : vector<2x32xi32>
    %c15_i32_64 = arith.constant 15 : i32
    %210 = vector.broadcast %c15_i32_64 : i32 to vector<2x32xi32>
    %211 = arith.shrui %209, %210 : vector<2x32xi32>
    %212 = arith.xori %209, %211 : vector<2x32xi32>
    %c-2073254261_i32_65 = arith.constant -2073254261 : i32
    %213 = vector.broadcast %c-2073254261_i32_65 : i32 to vector<2x32xi32>
    %214 = arith.muli %212, %213 : vector<2x32xi32>
    %c16_i32_66 = arith.constant 16 : i32
    %215 = vector.broadcast %c16_i32_66 : i32 to vector<2x32xi32>
    %216 = arith.shrui %214, %215 : vector<2x32xi32>
    %217 = arith.xori %214, %216 : vector<2x32xi32>
    %218 = arith.cmpi slt, %217, %202 : vector<2x32xi32>
    %219 = arith.extui %218 : vector<2x32xi1> to vector<2x32xi32>
    %220 = arith.sitofp %219 : vector<2x32xi32> to vector<2x32xf32>
    %cst_67 = arith.constant 1.600000e+01 : f32
    %221 = vector.broadcast %cst_67 : f32 to vector<2x32xf32>
    %222 = arith.mulf %17, %221 : vector<2x32xf32>
    %223 = arith.fptosi %222 : vector<2x32xf32> to vector<2x32xi32>
    %c1_i32_68 = arith.constant 1 : i32
    %224 = vector.broadcast %c1_i32_68 : i32 to vector<2x32xi32>
    %225 = arith.andi %223, %224 : vector<2x32xi32>
    %c1_i32_69 = arith.constant 1 : i32
    %226 = vector.broadcast %c1_i32_69 : i32 to vector<2x32xi32>
    %227 = arith.cmpi eq, %225, %226 : vector<2x32xi32>
    %c-1670265060_i32_70 = arith.constant -1670265060 : i32
    %c-719553722_i32_71 = arith.constant -719553722 : i32
    %228 = vector.broadcast %c-1670265060_i32_70 : i32 to vector<2x32xi32>
    %229 = vector.broadcast %c-719553722_i32_71 : i32 to vector<2x32xi32>
    %230 = arith.select %227, %228, %229 : vector<2x32xi1>, vector<2x32xi32>
    %c7_i32 = arith.constant 7 : i32
    %231 = vector.broadcast %c7_i32 : i32 to vector<2x32xi32>
    %232 = arith.addi %31, %231 : vector<2x32xi32>
    %c16_i32_72 = arith.constant 16 : i32
    %233 = vector.broadcast %c16_i32_72 : i32 to vector<2x32xi32>
    %234 = arith.shrui %232, %233 : vector<2x32xi32>
    %235 = arith.xori %232, %234 : vector<2x32xi32>
    %c2146121005_i32_73 = arith.constant 2146121005 : i32
    %236 = vector.broadcast %c2146121005_i32_73 : i32 to vector<2x32xi32>
    %237 = arith.muli %235, %236 : vector<2x32xi32>
    %c15_i32_74 = arith.constant 15 : i32
    %238 = vector.broadcast %c15_i32_74 : i32 to vector<2x32xi32>
    %239 = arith.shrui %237, %238 : vector<2x32xi32>
    %240 = arith.xori %237, %239 : vector<2x32xi32>
    %c-2073254261_i32_75 = arith.constant -2073254261 : i32
    %241 = vector.broadcast %c-2073254261_i32_75 : i32 to vector<2x32xi32>
    %242 = arith.muli %240, %241 : vector<2x32xi32>
    %c16_i32_76 = arith.constant 16 : i32
    %243 = vector.broadcast %c16_i32_76 : i32 to vector<2x32xi32>
    %244 = arith.shrui %242, %243 : vector<2x32xi32>
    %245 = arith.xori %242, %244 : vector<2x32xi32>
    %246 = arith.cmpi slt, %245, %230 : vector<2x32xi32>
    %247 = arith.extui %246 : vector<2x32xi1> to vector<2x32xi32>
    %248 = arith.sitofp %247 : vector<2x32xi32> to vector<2x32xf32>
    %249 = vector.shape_cast %52 : vector<2x32xf32> to vector<2x32x1xf32>
    %250 = vector.shape_cast %80 : vector<2x32xf32> to vector<2x32x1xf32>
    %251 = vector.shape_cast %108 : vector<2x32xf32> to vector<2x32x1xf32>
    %252 = vector.shape_cast %136 : vector<2x32xf32> to vector<2x32x1xf32>
    %253 = vector.shape_cast %164 : vector<2x32xf32> to vector<2x32x1xf32>
    %254 = vector.shape_cast %192 : vector<2x32xf32> to vector<2x32x1xf32>
    %255 = vector.shape_cast %220 : vector<2x32xf32> to vector<2x32x1xf32>
    %256 = vector.shape_cast %248 : vector<2x32xf32> to vector<2x32x1xf32>
    %257 = tpu.concatenate %249, %250, %251, %252, %253, %254, %255, %256 in 2 : vector<2x32x1xf32>, vector<2x32x1xf32>, vector<2x32x1xf32>, vector<2x32x1xf32>, vector<2x32x1xf32>, vector<2x32x1xf32>, vector<2x32x1xf32>, vector<2x32x1xf32> -> vector<2x32x8xf32>
    %258 = vector.shape_cast %257 : vector<2x32x8xf32> to vector<2x256xf32>
    %c0_77 = arith.constant 0 : index
    %c0_78 = arith.constant 0 : index
    %259 = vector.load %arg3[%c0_77, %c0_78] : memref<2x256xf32, #tpu.memory_space<vmem>>, vector<2x256xf32>
    tpu.vector_store %arg3[%c0_77, %c0_78], %258 {strides = array<i32>} : memref<2x256xf32, #tpu.memory_space<vmem>>, vector<2x256xf32>,
    return
  }
  func.func @transform_0(%arg0: i32, %arg1: memref<1xi32, #tpu.memory_space<smem>>) -> (i32, i32) {
    %c0_i32 = arith.constant 0 : i32
    %c0_i32_0 = arith.constant 0 : i32
    return %arg0, %c0_i32 : i32, i32
  }
  func.func @transform_1(%arg0: i32, %arg1: memref<1xi32, #tpu.memory_space<smem>>) -> (i32, i32) {
    %c0_i32 = arith.constant 0 : i32
    %c0_i32_0 = arith.constant 0 : i32
    return %arg0, %c0_i32 : i32, i32
  }
}

</mosaic_0001>

<bundles_post_ra>
// kernel: tpu_custom_call.1
= control target key start
LH: loop header
LB: loop body
LE: loop exit
PB: predicated region body
PF: predicated region fallthrough
CT: control target
= control target key end

     0   :  { %vm12_vm0 = vcmask 254976   ;;  %s1445_s0 = inlined_call_operand.<no memory space> [shape: s32[1], index: 0, kind: input, shape index: {}]   ;;  %s1446_s1 = inlined_call_operand.vmem [shape: f32[2,32], index: 1, kind: input, shape index: {}]   ;;  %s1447_s2 = inlined_call_operand.hbm [shape: f32[2,256], index: 2, kind: output, shape index: {}]  }
   0x1   :  { %v11_v0 = vld [vmem:[%s1446_s1] sm:$0x3] }
   0x2   :  { %8 = vsyncpa [#allocation5], 0  ;;  %v13_v1 = vsel %vm12_vm0, %v11_v0, 0.0  ;;  %v29_v7 = vlaneseq  ;;  %s39_s1 = smul.u32 2654435769, %s1445_s0  ;;  %v1064_v53 = vmov 0.0  }
   0x3   :  { %14 = vadd.xlane.f32.xlu0 %v13_v1  ;;  %v1063_v45 = vmov 3575413574   ;;  %s1067_s0 = smov 16   ;;  %s1068_s13 = smov 64  }
   0x4   :  { %v1101_v8 = vshrl.u32 %v29_v7, 7  ;;  %v34_v9 = vand.u32 127, %v29_v7  ;;  %v40_v13 = vstv %s39_s1  ;;  %s1069_s14 = smov 80   ;;  %s1070_s15 = smov 8  }
   0x5   :  { %s1071_s16 = smov 24   ;;  %s1072_s17 = smov 32  }
   0x6   :  { %v35_v10 = vmul.u32 32, %v1101_v8  ;;  %v1118_v44 = vsub.s32 0, %v1101_v8  ;;  %s1073_s18 = smov 48   ;;  %s1074_s19 = smov 72  }
   0x7   :  { %s1075_s20 = smov 88   ;;  %s1076_s21 = smov 96  }
   0x8   :  { %v36_v11 = vadd.s32 %v35_v10, %v34_v9  ;;  %s1077_s22 = smov 112   ;;  %s1078_s23 = smov 40  }
   0x9   :  { %s1079_s24 = smov 56   ;;  %s1080_s25 = smov 104  }
   0xa   :  { %v37_v12 = vmul.u32 8, %v36_v11  ;;  %v1133_v11 = vsub.s32 1, %v1101_v8  ;;  %s1081_s26 = smov 120   ;;  %s1082_s27 = smov [#allocation4]  }
   0xb   :  { %s986_s28 = sshll.u32 %s1082_s27, 4  ;;  %s987_s28 = int_to_ptr.vmem [resolvable:$true] %s986_s28 }
   0xc   :  { %v1107_v14 = vadd.s32 %v40_v13, %v37_v12  ;;  %s1039_s29 = scalar_lea.vmem %s987_s28, 64  ;;  %p1044_p1 = scmp.lt.s32.totalorder %s987_s28, %s987_s28 }
   0xd   :  { %p1040_p0 = scmp.ne.s32.totalorder %s987_s28, %s1039_s29  ;;  %p1045_p2 = scmp.lt.s32.totalorder %s1039_s29, %s1039_s29 }
   0xe   :  { %v43_v15 = vshrl.u32 %v1107_v14, 16  ;;  %v58_v17 = vadd.s32 1, %v1107_v14  ;;  %v75_v24 = vadd.s32 2, %v1107_v14  ;;  %v160_v25 = vadd.s32 7, %v1107_v14 }
   0xf   :  { %v92_v38 = vadd.s32 3, %v1107_v14  ;;  %v109_v59 = vadd.s32 4, %v1107_v14  ;;  %p1046_p3 = por %p1045_p2, %p1044_p1 }
  0x10   :  { %v44_v16 = vxor.u32 %v43_v15, %v1107_v14  ;;  %v59_v19 = vshrl.u32 %v58_v17, 16  ;;  %v76_v28 = vshrl.u32 %v75_v24, 16  ;;  %v161_v29 = vshrl.u32 %v160_v25, 16 }
  0x11   :  { %v93_v48 = vshrl.u32 %v92_v38, 16  ;;  %v110_v7 = vshrl.u32 %v109_v59, 16  ;;  %v126_v15 = vadd.s32 5, %v1107_v14  ;;  %p1047_p4 = pnand %p1046_p3, %p1040_p0 }
  0x12   :  { %v45_v18 = vmul.u32 2146121005, %v44_v16  ;;  %v60_v21 = vxor.u32 %v59_v19, %v58_v17  ;;  %v77_v32 = vxor.u32 %v76_v28, %v75_v24  ;;  %v162_v33 = vxor.u32 %v161_v29, %v160_v25 }
  0x13   :  { %v94_v58 = vxor.u32 %v93_v48, %v92_v38 }
  0x14   :  { %v46_v20 = vshrl.u32 %v45_v18, 15  ;;  %v61_v27 = vmul.u32 2146121005, %v60_v21  ;;  %v78_v37 = vmul.u32 2146121005, %v77_v32 }
  0x15   :  { %v163_v39 = vmul.u32 2146121005, %v162_v33 }
  0x16   :  { %v47_v26 = vxor.u32 %v46_v20, %v45_v18  ;;  %v62_v31 = vshrl.u32 %v61_v27, 15  ;;  %v79_v47 = vshrl.u32 %v78_v37, 15  ;;  %v111_v20 = vxor.u32 %v110_v7, %v109_v59 }
  0x17   :  { %v164_v49 = vshrl.u32 %v163_v39, 15 }
  0x18   :  { %v48_v30 = vmul.u32 2221713035, %v47_v26  ;;  %v63_v35 = vxor.u32 %v62_v31, %v61_v27  ;;  %v80_v63 = vxor.u32 %v79_v47, %v78_v37  ;;  %v112_v28 = vmul.u32 2146121005, %v111_v20 }
  0x19   :  { %v165_v60 = vxor.u32 %v164_v49, %v163_v39 }
  0x1a   :  { %v49_v34 = vshrl.u32 %v48_v30, 16  ;;  %v64_v42 = vmul.u32 2221713035, %v63_v35  ;;  %v143_v35 = vadd.s32 6, %v1107_v14  ;;  %v113_v37 = vshrl.u32 %v112_v28, 15 }
  0x1c   :  { %v50_v41 = vxor.u32 %v49_v34, %v48_v30  ;;  %v65_v51 = vshrl.u32 %v64_v42, 16  ;;  %v144_v48 = vshrl.u32 %v143_v35, 16 }
  0x1e   :  { %v66_v62 = vxor.u32 %v65_v51, %v64_v42 }
  0x90   :  { %v15_v2 = vpop.xlane.xlu0 %14 }
  0x91   :  { %v17_v3 = vmul.f32 0.03125, %v15_v2 }
  0x93   :  { %v18_v4 = vsub.f32 %v11_v0, %v17_v3 }
  0x95   :  { %v19_v5 = vmul.f32 %v18_v4, %v18_v4 }
  0x97   :  { %v20_v6 = vsel %vm12_vm0, %v19_v5, 0.0  ;;  %v81_v5 = vmul.u32 2221713035, %v80_v63 }
  0x98   :  { %21 = vadd.xlane.f32.xlu0 %v20_v6  ;;  %v95_v6 = vmul.u32 2146121005, %v94_v58 }
  0x99   :  { %v82_v18 = vshrl.u32 %v81_v5, 16 }
  0x9a   :  { %v96_v19 = vshrl.u32 %v95_v6, 15 }
  0x9b   :  { %v83_v26 = vxor.u32 %v82_v18, %v81_v5 }
  0x9c   :  { %v97_v27 = vxor.u32 %v96_v19, %v95_v6 }
 0x125   :  { %v22_v22 = vpop.xlane.xlu0 %21 }
 0x126   :  { %v23_v23 = vmul.f32 0.032258064, %v22_v22 }
 0x128   :  { %1037 = vrsqrt.f32 %v23_v23  ;;  %v127_v23 = vshrl.u32 %v126_v15, 16 }
 0x12a   :  { %v128_v34 = vxor.u32 %v127_v23, %v126_v15 }
 0x12c   :  { %v129_v47 = vmul.u32 2146121005, %v128_v34 }
 0x132   :  { %v1038_v36 = vpop.eup %1037 }
 0x133   :  { %v25_v40 = vmul.f32 %v1038_v36, %v18_v4  ;;  %v166_v4 = vmul.u32 2221713035, %v165_v60  ;;  %v98_v36 = vmul.u32 2221713035, %v97_v27 }
 0x135   :  { %v1115_v43 = vand.u32 2147483647, %v25_v40  ;;  %vm26_vm1 = vcmp.lt.f32.partialorder %v25_v40, 0.0  ;;  %v167_v17 = vshrl.u32 %v166_v4, 16  ;;  %v99_v14 = vshrl.u32 %v98_v36, 16 }
 0x136   :  { %v42_v46 = vsel %vm26_vm1, 715827883, %v1063_v45  ;;  %vm476_vm1 = vcmask 7168  }
 0x137   :  { %vm51_vm2 = vcmp.lt.s32.totalorder %v50_v41, %v42_v46  ;;  %v1003_v50 = vtrunc.f32 %v1115_v43  ;;  %v70_v52 = vmul.f32 0.5, %v1115_v43  ;;  %v155_v0 = vmul.f32 16.0, %v1115_v43 }
 0x138   :  { %v994_v54 = vsel %vm51_vm2, 1.0, %v1064_v53  ;;  %v87_v13 = vmul.f32 0.25, %v1115_v43  ;;  %v168_v25 = vxor.u32 %v167_v17, %v166_v4  ;;  %v104_v32 = vmul.f32 2.0, %v1115_v43 }
 0x139   :  { %v175_v55 = vrot.slane %v994_v54, %v1118_v44  ;;  %v1004_v56 = vcvt.f32.s32 %v1003_v50  ;;  %v1005_v57 = vtrunc.f32 %v70_v52  ;;  %v1015_v3 = vtrunc.f32 %v155_v0 }
 0x13a   :  { %v194_v21 = vrot.slane %v994_v54, %v1133_v11  ;;  %v1007_v22 = vtrunc.f32 %v87_v13  ;;  %v1009_v41 = vtrunc.f32 %v104_v32  ;;  %v114_v46 = vxor.u32 %v113_v37, %v112_v28 }
 0x13b   :  { %185 = vbcast.lane.b32.xlu0 %v175_v55, 272  ;;  %177 = vbcast.lane.b32.xlu1 %v175_v55, 256  ;;  %v55_v61 = vand.u32 1, %v1004_v56  ;;  %v1006_v1 = vcvt.f32.s32 %v1005_v57  ;;  %v1016_v16 = vcvt.f32.s32 %v1015_v3  ;;  %v121_v51 = vmul.f32 4.0, %v1115_v43 }
 0x13c   :  { %v1008_v31 = vcvt.f32.s32 %v1007_v22  ;;  %v1010_v50 = vcvt.f32.s32 %v1009_v41  ;;  %v100_v52 = vxor.u32 %v99_v14, %v98_v36  ;;  %v115_v54 = vmul.u32 2221713035, %v114_v46 }
 0x13d   :  { %vm56_vm3 = vcmp.eq.s32.totalorder %v55_v61, 1  ;;  %v72_v12 = vand.u32 1, %v1006_v1  ;;  %v157_v24 = vand.u32 1, %v1016_v16  ;;  %v145_v56 = vxor.u32 %v144_v48, %v143_v35 }
 0x13e   :  { %v57_v2 = vsel %vm56_vm3, 2624702236, %v1063_v45  ;;  %v89_v40 = vand.u32 1, %v1008_v31  ;;  %v106_v58 = vand.u32 1, %v1010_v50  ;;  %v1011_v59 = vtrunc.f32 %v121_v51 }
 0x13f   :  { %181 = vbcast.lane.b32.xlu1 %v175_v55, 264  ;;  %vm67_vm4 = vcmp.lt.s32.totalorder %v66_v62, %v57_v2  ;;  %vm73_vm5 = vcmp.eq.s32.totalorder %v72_v12, 1  ;;  %vm158_vm6 = vcmp.eq.s32.totalorder %v157_v24, 1  ;;  %v116_v60 = vshrl.u32 %v115_v54, 16 }
 0x140   :  { %v995_v9 = vsel %vm67_vm4, 1.0, %v1064_v53  ;;  %v74_v29 = vsel %vm73_vm5, 715827883, %v1063_v45  ;;  %v159_v33 = vsel %vm158_vm6, 2624702236, %v1063_v45  ;;  %vm90_vm9 = vcmp.eq.s32.totalorder %v89_v40, 1 }
 0x141   :  { %v1130_v10 = vrot.slane %v995_v9, %v1118_v44  ;;  %v1142_v30 = vrot.slane %v995_v9, %v1133_v11  ;;  %vm169_vm7 = vcmp.lt.s32.totalorder %v168_v25, %v159_v33  ;;  %vm84_vm8 = vcmp.lt.s32.totalorder %v83_v26, %v74_v29 }
 0x142   :  { %v1149_v38 = vsel %vm169_vm7, 1.0, %v1064_v53  ;;  %v996_v42 = vsel %vm84_vm8, 1.0, %v1064_v53  ;;  %v91_v57 = vsel %vm90_vm9, 2624702236, %v1063_v45  ;;  %v146_v62 = vmul.u32 2146121005, %v145_v56 }
 0x143   :  { %219 = vbcast.lane.b32.xlu0 %v1130_v10, 264  ;;  %189 = vbcast.lane.b32.xlu1 %v175_v55, 280  ;;  %v1153_v39 = vrot.slane %v1149_v38, %v1118_v44  ;;  %v251_v49 = vrot.slane %v996_v42, %v1118_v44  ;;  %v130_v55 = vshrl.u32 %v129_v47, 15  ;;  %vm101_vm10 = vcmp.lt.s32.totalorder %v100_v52, %v91_v57 }
 0x144   :  { %v1162_v63 = vrot.slane %v996_v42, %v1133_v11  ;;  %vm107_vm11 = vcmp.eq.s32.totalorder %v106_v58, 1  ;;  %v1012_v0 = vcvt.f32.s32 %v1011_v59  ;;  %v138_v1 = vmul.f32 8.0, %v1115_v43 }
 0x145   :  { %v131_v61 = vxor.u32 %v130_v55, %v129_v47  ;;  %v997_v2 = vsel %vm101_vm10, 1.0, %v1064_v53  ;;  %v117_v3 = vxor.u32 %v116_v60, %v115_v54  ;;  %v147_v5 = vshrl.u32 %v146_v62, 15 }
 0x146   :  { %v108_v6 = vsel %vm107_vm11, 715827883, %v1063_v45  ;;  %v289_v7 = vrot.slane %v997_v2, %v1118_v44  ;;  %v123_v9 = vand.u32 1, %v1012_v0  ;;  %v1013_v12 = vtrunc.f32 %v138_v1 }
 0x147   :  { %227 = vbcast.lane.b32.xlu0 %v1130_v10, 280  ;;  %196 = vbcast.lane.b32.xlu1 %v194_v21, 256  ;;  %v132_v4 = vmul.u32 2221713035, %v131_v61  ;;  %vm118_vm12 = vcmp.lt.s32.totalorder %v117_v3, %v108_v6  ;;  %v148_v13 = vxor.u32 %v147_v5, %v146_v62  ;;  %v308_v15 = vrot.slane %v997_v2, %v1133_v11 }
 0x148   :  { %vm124_vm13 = vcmp.eq.s32.totalorder %v123_v9, 1  ;;  %v1014_v16 = vcvt.f32.s32 %v1013_v12  ;;  %vm485_vm2 = vcmask 15360   ;;  %v1065_v9 = vmov 1983009808  }
 0x149   :  { %v133_v43 = vshrl.u32 %v132_v4, 16  ;;  %v149_v18 = vmul.u32 2221713035, %v148_v13  ;;  %v125_v19 = vsel %vm124_vm13, 2624702236, %v1063_v45  ;;  %v541_v12 = vunpack.c.l.s4 %v1065_v9 }
 0x14a   :  { %vm494_vm3 = vcmask 23552   ;;  %vm503_vm4 = vcmask 31744   ;;  %vm512_vm5 = vcmask 39936   ;;  %vm521_vm6 = vcmask 48128  }
 0x14b   :  { %238 = vbcast.lane.b32.xlu0 %v1142_v30, 264  ;;  %200 = vbcast.lane.b32.xlu1 %v194_v21, 264  ;;  %v134_v17 = vxor.u32 %v133_v43, %v132_v4  ;;  %v150_v22 = vshrl.u32 %v149_v18, 16  ;;  %vm530_vm7 = vcmask 56320   ;;  %vm923_vm8 = vcmask 64512  }
 0x14c   :  { %vm925_vm9 = vcmask 130048   ;;  %vm927_vm10 = vcmask 195584   ;;  %vm929_vm11 = vcmask 261120   ;;  %vm933_vm13 = vcmask 392192  }
 0x14d   :  { %vm135_vm14 = vcmp.lt.s32.totalorder %v134_v17, %v125_v19  ;;  %v151_v25 = vxor.u32 %v150_v22, %v149_v18  ;;  %v542_v18 = vunpack.c.0.s8 %v541_v12 }
 0x14e   :  { %v999_v24 = vsel %vm135_vm14, 1.0, %v1064_v53  ;;  %vm935_vm14 = vcmask 457728  }
 0x14f   :  { %246 = vbcast.lane.b32.xlu0 %v1142_v30, 280  ;;  %204 = vbcast.lane.b32.xlu1 %v194_v21, 272  ;;  %v365_v27 = vrot.slane %v999_v24, %v1118_v44  ;;  %v384_v28 = vrot.slane %v999_v24, %v1133_v11 }
 0x153   :  { %257 = vbcast.lane.b32.xlu0 %v251_v49, 264  ;;  %208 = vbcast.lane.b32.xlu1 %v194_v21, 280  ;;  %v140_v21 = vand.u32 1, %v1014_v16 }
 0x155   :  { %vm141_vm15 = vcmp.eq.s32.totalorder %v140_v21, 1 }
 0x156   :  { %v142_v26 = vsel %vm141_vm15, 715827883, %v1063_v45  ;;  %v460_v45 = vrot.slane %v1149_v38, %v1133_v11  ;;  %vm937_vm15 = vcmask 523264  }
 0x157   :  { %265 = vbcast.lane.b32.xlu0 %v251_v49, 280  ;;  %215 = vbcast.lane.b32.xlu1 %v1130_v10, 256  ;;  %vm152_vm0 = vcmp.lt.s32.totalorder %v151_v25, %v142_v26  ;;  %v1222_v25 = vsub.s32 %v542_v18, %v1101_v8 }
 0x158   :  { %v1000_v29 = vsel %vm152_vm0, 1.0, %v1064_v53  ;;  %vm939_vm0 = vcmask 588800  }
 0x159   :  { %v422_v31 = vrot.slane %v1000_v29, %v1133_v11 }
 0x15b   :  { %280 = vbcast.lane.b32.xlu0 %v1162_v63, 272  ;;  %223 = vbcast.lane.b32.xlu1 %v1130_v10, 272  ;;  %v998_v10 = vsel %vm118_vm12, 1.0, %v1064_v53  ;;  %vm931_vm12 = vcmask 326656  }
 0x15c   :  { %v327_v20 = vrot.slane %v998_v10, %v1118_v44  ;;  %v346_v23 = vrot.slane %v998_v10, %v1133_v11  ;;  %v1066_v10 = vmov 1934713408  }
 0x15d   :  { %v572_v17 = vunpack.c.l.s4 %v1066_v10 }
 0x15f   :  { %299 = vbcast.lane.b32.xlu0 %v289_v7, 272  ;;  %234 = vbcast.lane.b32.xlu1 %v1142_v30, 256  ;;  %v573_v26 = vunpack.c.0.s8 %v572_v17 }
 0x163   :  { %318 = vbcast.lane.b32.xlu0 %v308_v15, 272  ;;  %242 = vbcast.lane.b32.xlu1 %v1142_v30, 272  ;;  %v403_v30 = vrot.slane %v1000_v29, %v1118_v44 }
 0x167   :  { %337 = vbcast.lane.b32.xlu0 %v327_v20, 272  ;;  %253 = vbcast.lane.b32.xlu1 %v251_v49, 256 }
 0x16b   :  { %356 = vbcast.lane.b32.xlu0 %v346_v23, 272  ;;  %261 = vbcast.lane.b32.xlu1 %v251_v49, 272 }
 0x16f   :  { %375 = vbcast.lane.b32.xlu0 %v365_v27, 272  ;;  %272 = vbcast.lane.b32.xlu1 %v1162_v63, 256 }
 0x173   :  { %394 = vbcast.lane.b32.xlu0 %v384_v28, 272  ;;  %291 = vbcast.lane.b32.xlu1 %v289_v7, 256 }
 0x177   :  { %413 = vbcast.lane.b32.xlu0 %v403_v30, 272  ;;  %310 = vbcast.lane.b32.xlu1 %v308_v15, 256 }
 0x17b   :  { %432 = vbcast.lane.b32.xlu0 %v422_v31, 272  ;;  %329 = vbcast.lane.b32.xlu1 %v327_v20, 256 }
 0x17f   :  { %451 = vbcast.lane.b32.xlu0 %v1153_v39, 272  ;;  %348 = vbcast.lane.b32.xlu1 %v346_v23, 256 }
 0x183   :  { %470 = vbcast.lane.b32.xlu0 %v460_v45, 272  ;;  %367 = vbcast.lane.b32.xlu1 %v365_v27, 256 }
 0x187   :  { %284 = vbcast.lane.b32.xlu0 %v1162_v63, 280  ;;  %386 = vbcast.lane.b32.xlu1 %v384_v28, 256 }
 0x18b   :  { %303 = vbcast.lane.b32.xlu0 %v289_v7, 280  ;;  %405 = vbcast.lane.b32.xlu1 %v403_v30, 256 }
 0x18f   :  { %322 = vbcast.lane.b32.xlu0 %v308_v15, 280  ;;  %424 = vbcast.lane.b32.xlu1 %v422_v31, 256 }
 0x193   :  { %341 = vbcast.lane.b32.xlu0 %v327_v20, 280  ;;  %443 = vbcast.lane.b32.xlu1 %v1153_v39, 256 }
 0x197   :  { %360 = vbcast.lane.b32.xlu0 %v346_v23, 280  ;;  %462 = vbcast.lane.b32.xlu1 %v460_v45, 256 }
 0x19b   :  { %379 = vbcast.lane.b32.xlu0 %v365_v27, 280  ;;  %276 = vbcast.lane.b32.xlu1 %v1162_v63, 264 }
 0x19f   :  { %398 = vbcast.lane.b32.xlu0 %v384_v28, 280  ;;  %295 = vbcast.lane.b32.xlu1 %v289_v7, 264 }
 0x1a3   :  { %417 = vbcast.lane.b32.xlu0 %v403_v30, 280  ;;  %314 = vbcast.lane.b32.xlu1 %v308_v15, 264 }
 0x1a7   :  { %436 = vbcast.lane.b32.xlu0 %v422_v31, 280  ;;  %333 = vbcast.lane.b32.xlu1 %v327_v20, 264 }
 0x1ab   :  { %455 = vbcast.lane.b32.xlu0 %v1153_v39, 280  ;;  %352 = vbcast.lane.b32.xlu1 %v346_v23, 264 }
 0x1ad   :  { %v1192_v44 = vpop.permute.xlu1 %177  ;;  %v186_v11 = vpop.permute.xlu0 %185 }
 0x1af   :  { %474 = vbcast.lane.b32.xlu0 %v460_v45, 280  ;;  %371 = vbcast.lane.b32.xlu1 %v365_v27, 264 }
 0x1b1   :  { %v182_v32 = vpop.permute.xlu1 %181 }
 0x1b3   :  { %390 = vbcast.lane.b32.xlu1 %v384_v28, 264 }
 0x1b5   :  { %v220_v33 = vpop.permute.xlu0 %219  ;;  %v190_v34 = vpop.permute.xlu1 %189 }
 0x1b6   :  { %v478_v35 = vsel %vm476_vm1, %v182_v32, %v220_v33  ;;  %v1235_v33 = vsub.s32 %v573_v26, %v1101_v8 }
 0x1b7   :  { %409 = vbcast.lane.b32.xlu1 %v403_v30, 264 }
 0x1b9   :  { %v228_v36 = vpop.permute.xlu0 %227  ;;  %v1195_v37 = vpop.permute.xlu1 %196 }
 0x1ba   :  { %v480_v38 = vsel %vm476_vm1, %v190_v34, %v228_v36 }
 0x1bb   :  { %428 = vbcast.lane.b32.xlu1 %v422_v31, 264 }
 0x1bd   :  { %v239_v40 = vpop.permute.xlu0 %238  ;;  %v201_v41 = vpop.permute.xlu1 %200 }
 0x1be   :  { %v1199_v42 = vsel %vm476_vm1, %v201_v41, %v239_v40 }
 0x1bf   :  { %447 = vbcast.lane.b32.xlu1 %v1153_v39, 264 }
 0x1c1   :  { %v247_v14 = vpop.permute.xlu0 %246  ;;  %v205_v46 = vpop.permute.xlu1 %204 }
 0x1c3   :  { %466 = vbcast.lane.b32.xlu1 %v460_v45, 264 }
 0x1c5   :  { %v258_v47 = vpop.permute.xlu0 %257  ;;  %v209_v48 = vpop.permute.xlu1 %208 }
 0x1c6   :  { %v1203_v49 = vsel %vm485_vm2, %v478_v35, %v258_v47  ;;  %v1206_v50 = vsel %vm476_vm1, %v209_v48, %v247_v14 }
 0x1c9   :  { %v266_v51 = vpop.permute.xlu0 %265  ;;  %v1208_v52 = vpop.permute.xlu1 %215 }
 0x1ca   :  { %v1211_v54 = vsel %vm485_vm2, %v480_v38, %v266_v51  ;;  %v477_v48 = vsel %vm476_vm1, %v1192_v44, %v1208_v52 }
 0x1cd   :  { %v281_v55 = vpop.permute.xlu0 %280  ;;  %v224_v39 = vpop.permute.xlu1 %223 }
 0x1ce   :  { %v479_v4 = vsel %vm476_vm1, %v186_v11, %v224_v39 }
 0x1d1   :  { %v300_v56 = vpop.permute.xlu0 %299  ;;  %v235_v57 = vpop.permute.xlu1 %234 }
 0x1d5   :  { %v319_v58 = vpop.permute.xlu0 %318  ;;  %v243_v59 = vpop.permute.xlu1 %242 }
 0x1d6   :  { %v483_v43 = vsel %vm476_vm1, %v205_v46, %v243_v59 }
 0x1d7   :  { %v492_v19 = vsel %vm485_vm2, %v483_v43, %v281_v55  ;;  %v481_v55 = vsel %vm476_vm1, %v1195_v37, %v235_v57  ;;  %vm941_vm1 = vcmask 654336  }
 0x1d8   :  { %v501_v23 = vsel %vm494_vm3, %v492_v19, %v319_v58 }
 0x1d9   :  { %v338_v60 = vpop.permute.xlu0 %337  ;;  %v254_v61 = vpop.permute.xlu1 %253 }
 0x1da   :  { %v486_v51 = vsel %vm485_vm2, %v477_v48, %v254_v61 }
 0x1dd   :  { %v357_v62 = vpop.permute.xlu0 %356  ;;  %v262_v63 = vpop.permute.xlu1 %261 }
 0x1de   :  { %v488_v5 = vsel %vm485_vm2, %v479_v4, %v262_v63  ;;  %v510_v27 = vsel %vm503_vm4, %v501_v23, %v357_v62 }
 0x1df   :  { %v497_v13 = vsel %vm494_vm3, %v488_v5, %v300_v56 }
 0x1e0   :  { %v506_v20 = vsel %vm503_vm4, %v497_v13, %v338_v60 }
 0x1e1   :  { %v376_v0 = vpop.permute.xlu0 %375  ;;  %v273_v1 = vpop.permute.xlu1 %272 }
 0x1e2   :  { %v515_v24 = vsel %vm512_vm5, %v506_v20, %v376_v0  ;;  %v490_v56 = vsel %vm485_vm2, %v481_v55, %v273_v1 }
 0x1e5   :  { %v395_v2 = vpop.permute.xlu0 %394  ;;  %v292_v3 = vpop.permute.xlu1 %291 }
 0x1e6   :  { %v519_v29 = vsel %vm512_vm5, %v510_v27, %v395_v2  ;;  %v495_v39 = vsel %vm494_vm3, %v486_v51, %v292_v3 }
 0x1e9   :  { %v414_v6 = vpop.permute.xlu0 %413  ;;  %v311_v7 = vpop.permute.xlu1 %310 }
 0x1ea   :  { %v524_v28 = vsel %vm521_vm6, %v515_v24, %v414_v6  ;;  %v499_v62 = vsel %vm494_vm3, %v490_v56, %v311_v7 }
 0x1ed   :  { %v433_v15 = vpop.permute.xlu0 %432  ;;  %v330_v16 = vpop.permute.xlu1 %329 }
 0x1ee   :  { %v528_v31 = vsel %vm521_vm6, %v519_v29, %v433_v15  ;;  %v504_v58 = vsel %vm503_vm4, %v495_v39, %v330_v16 }
 0x1f1   :  { %v452_v21 = vpop.permute.xlu0 %451  ;;  %v349_v22 = vpop.permute.xlu1 %348 }
 0x1f2   :  { %v1228_v30 = vsel %vm530_vm7, %v524_v28, %v452_v21  ;;  %v508_v0 = vsel %vm503_vm4, %v499_v62, %v349_v22 }
 0x1f3   :  { %v1239_v34 = vrot.slane %v1228_v30, %v1222_v25 }
 0x1f5   :  { %v471_v45 = vpop.permute.xlu0 %470  ;;  %v368_v11 = vpop.permute.xlu1 %367 }
 0x1f6   :  { %v1232_v32 = vsel %vm530_vm7, %v528_v31, %v471_v45  ;;  %v513_v63 = vsel %vm512_vm5, %v504_v58, %v368_v11 }
 0x1f7   :  { %v1243_v35 = vrot.slane %v1232_v32, %v1222_v25 }
 0x1f9   :  { %v702_v36 = vcombine.high %v1239_v34, %v1243_v35  ;;  %v285_v38 = vpop.permute.xlu0 %284  ;;  %v387_v40 = vpop.permute.xlu1 %386  ;;  %v701_v58 = vcombine.low %v1239_v34, %v1243_v35  ;;  %v671_v35 = vcombine.high %v1228_v30, %v1064_v53 }
 0x1fa   :  { %v517_v52 = vsel %vm512_vm5, %v508_v0, %v387_v40  ;;  %v493_v23 = vsel %vm485_vm2, %v1206_v50, %v285_v38 }
 0x1fb   :  { %v1248_v41 = vrot.slane %v702_v36, %v1235_v33  ;;  %v1333_v34 = vrot.slane %v701_v58, %v1235_v33 }
 0x1fd   :  { %v304_v14 = vpop.permute.xlu0 %303  ;;  %868 = vrot.lane.b32.xlu0 %v1248_v41, %s1067_s0  ;;  %v406_v8 = vpop.permute.xlu1 %405  ;;  %v734_v30 = vcombine.high %v1248_v41, %v1064_v53 }
 0x1fe   :  { %v522_v44 = vsel %vm521_vm6, %v513_v63, %v406_v8 }
 0x201   :  { %v323_v46 = vpop.permute.xlu0 %322  ;;  %v425_v47 = vpop.permute.xlu1 %424 }
 0x202   :  { %v526_v57 = vsel %vm521_vm6, %v517_v52, %v425_v47  ;;  %v502_v27 = vsel %vm494_vm3, %v493_v23, %v323_v46 }
 0x205   :  { %v342_v59 = vpop.permute.xlu0 %341  ;;  %v444_v60 = vpop.permute.xlu1 %443 }
 0x206   :  { %v1267_v37 = vsel %vm530_vm7, %v522_v44, %v444_v60  ;;  %v686_v44 = vcombine.high %v1232_v32, %v1064_v53  ;;  %v685_v32 = vrot.slane %v671_v35, %v1222_v25 }
 0x207   :  { %v1275_v3 = vrot.slane %v1267_v37, %v1222_v25 }
 0x209   :  { %v361_v61 = vpop.permute.xlu0 %360  ;;  %v463_v1 = vpop.permute.xlu1 %462 }
 0x20a   :  { %v1271_v2 = vsel %vm530_vm7, %v526_v57, %v463_v1  ;;  %v700_v1 = vrot.slane %v686_v44, %v1222_v25 }
 0x20b   :  { %v1279_v4 = vrot.slane %v1271_v2, %v1222_v25 }
 0x20d   :  { %v570_v5 = vcombine.high %v1275_v3, %v1279_v4  ;;  %v380_v6 = vpop.permute.xlu0 %379  ;;  %v277_v7 = vpop.permute.xlu1 %276  ;;  %v569_v23 = vcombine.low %v1275_v3, %v1279_v4  ;;  %v539_v3 = vcombine.high %v1267_v37, %v1064_v53 }
 0x20e   :  { %v491_v9 = vsel %vm485_vm2, %v1199_v42, %v277_v7  ;;  %v498_v42 = vsel %vm494_vm3, %v1211_v54, %v304_v14  ;;  %v511_v54 = vsel %vm503_vm4, %v502_v27, %v361_v61  ;;  %v554_v27 = vcombine.high %v1271_v2, %v1064_v53 }
 0x20f   :  { %v1286_v12 = vrot.slane %v570_v5, %v1235_v33  ;;  %v507_v21 = vsel %vm503_vm4, %v498_v42, %v342_v59  ;;  %v733_v5 = vcombine.high %v1333_v34, %v1064_v53  ;;  %vm943_vm2 = vcmask 719872  }
 0x210   :  { %v516_v22 = vsel %vm512_vm5, %v507_v21, %v380_v6  ;;  %v568_v4 = vrot.slane %v554_v27, %v1222_v25 }
 0x211   :  { %v399_v43 = vpop.permute.xlu0 %398  ;;  %808 = vrot.lane.b32.xlu1 %v1286_v12, %s1067_s0  ;;  %v296_v13 = vpop.permute.xlu1 %295 }
 0x212   :  { %v496_v15 = vsel %vm494_vm3, %v1203_v49, %v296_v13  ;;  %v520_v31 = vsel %vm512_vm5, %v511_v54, %v399_v43  ;;  %v1368_v54 = vrot.slane %v569_v23, %v1235_v33 }
 0x214   :  { %v601_v2 = vcombine.high %v1368_v54, %v1064_v53 }
 0x215   :  { %v418_v16 = vpop.permute.xlu0 %417  ;;  %v315_v10 = vpop.permute.xlu1 %314 }
 0x216   :  { %v500_v17 = vsel %vm494_vm3, %v491_v9, %v315_v10  ;;  %v525_v49 = vsel %vm521_vm6, %v516_v22, %v418_v16  ;;  %v717_v9 = vcombine.low %v685_v32, %v700_v1  ;;  %v718_v16 = vcombine.high %v685_v32, %v700_v1 }
 0x217   :  { %vm945_vm3 = vcmask 785408  }
 0x218   :  { %v732_v22 = vrot.slane %v718_v16, %v1235_v33 }
 0x219   :  { %v437_v18 = vpop.permute.xlu0 %436  ;;  %v334_v19 = vpop.permute.xlu1 %333 }
 0x21a   :  { %v505_v20 = vsel %vm503_vm4, %v496_v15, %v334_v19  ;;  %v529_v45 = vsel %vm521_vm6, %v520_v31, %v437_v18  ;;  %v725_v19 = vrot.slane %v717_v9, %v1235_v33 }
 0x21d   :  { %v456_v24 = vpop.permute.xlu0 %455  ;;  %v353_v26 = vpop.permute.xlu1 %352 }
 0x21e   :  { %v534_v28 = vsel %vm530_vm7, %v525_v49, %v456_v24  ;;  %v509_v29 = vsel %vm503_vm4, %v500_v17, %v353_v26  ;;  %vm947_vm4 = vcmask 850944  }
 0x21f   :  { %v737_v11 = vcombine.high %v534_v28, %v1064_v53  ;;  %v744_v14 = vrot.slane %v534_v28, %v1222_v25 }
 0x221   :  { %v475_v36 = vpop.permute.xlu0 %474  ;;  %v372_v50 = vpop.permute.xlu1 %371  ;;  %v1314_v47 = vrot.slane %v737_v11, %v1222_v25  ;;  %v602_v11 = vcombine.high %v1286_v12, %v1064_v53 }
 0x222   :  { %v538_v38 = vsel %vm530_vm7, %v529_v45, %v475_v36  ;;  %v514_v40 = vsel %vm512_vm5, %v505_v20, %v372_v50  ;;  %v553_v45 = vrot.slane %v539_v3, %v1222_v25 }
 0x223   :  { %v752_v8 = vcombine.high %v538_v38, %v1064_v53  ;;  %v759_v46 = vrot.slane %v538_v38, %v1222_v25 }
 0x224   :  { %v585_v36 = vcombine.low %v553_v45, %v568_v4  ;;  %v586_v38 = vcombine.high %v553_v45, %v568_v4 }
 0x225   :  { %v1317_v48 = vrot.slane %v752_v8, %v1222_v25  ;;  %v767_v51 = vcombine.low %v744_v14, %v759_v46  ;;  %v768_v55 = vcombine.high %v744_v14, %v759_v46  ;;  %v391_v39 = vpop.permute.xlu1 %390  ;;  %v736_v14 = vcombine.high %v732_v22, %v1064_v53 }
 0x226   :  { %v518_v56 = vsel %vm512_vm5, %v509_v29, %v391_v39  ;;  %v600_v12 = vrot.slane %v586_v38, %v1235_v33  ;;  %vm949_vm5 = vcmask 916480  }
 0x227   :  { %v775_v59 = vrot.slane %v767_v51, %v1235_v33  ;;  %v783_v60 = vcombine.low %v1314_v47, %v1317_v48  ;;  %v784_v62 = vcombine.high %v1314_v47, %v1317_v48  ;;  %v782_v52 = vrot.slane %v768_v55, %v1235_v33 }
 0x229   :  { %892 = vrot.lane.b32.xlu0 %v775_v59, %s1068_s13  ;;  %v410_v63 = vpop.permute.xlu1 %409  ;;  %v799_v28 = vcombine.high %v775_v59, %v1064_v53  ;;  %v800_v31 = vcombine.high %v782_v52, %v1064_v53  ;;  %v791_v37 = vrot.slane %v783_v60, %v1235_v33  ;;  %v798_v50 = vrot.slane %v784_v62, %v1235_v33 }
 0x22a   :  { %v523_v0 = vsel %vm521_vm6, %v514_v40, %v410_v63  ;;  %v735_v40 = vcombine.high %v725_v19, %v1064_v53 }
 0x22b   :  { %v801_v46 = vcombine.high %v791_v37, %v1064_v53  ;;  %v802_v48 = vcombine.high %v798_v50, %v1064_v53 }
 0x22d   :  { %900 = vrot.lane.b32.xlu0 %v782_v52, %s1069_s14  ;;  %v429_v57 = vpop.permute.xlu1 %428 }
 0x22e   :  { %v527_v61 = vsel %vm521_vm6, %v518_v56, %v429_v57  ;;  %v604_v56 = vcombine.high %v600_v12, %v1064_v53  ;;  %vm951_vm6 = vcmask 982016  }
 0x231   :  { %864 = vrot.lane.b32.xlu0 %v733_v5, %s1070_s15  ;;  %v448_v6 = vpop.permute.xlu1 %447 }
 0x232   :  { %v532_v7 = vsel %vm530_vm7, %v523_v0, %v448_v6 }
 0x233   :  { %v605_v43 = vcombine.high %v532_v7, %v1064_v53  ;;  %v612_v10 = vrot.slane %v532_v7, %v1222_v25 }
 0x235   :  { %872 = vrot.lane.b32.xlu0 %v734_v30, %s1071_s16  ;;  %v467_v13 = vpop.permute.xlu1 %466  ;;  %v619_v41 = vrot.slane %v605_v43, %v1222_v25 }
 0x236   :  { %v536_v15 = vsel %vm530_vm7, %v527_v61, %v467_v13 }
 0x237   :  { %v620_v17 = vcombine.high %v536_v15, %v1064_v53  ;;  %v627_v18 = vrot.slane %v536_v15, %v1222_v25 }
 0x239   :  { %v634_v42 = vrot.slane %v620_v17, %v1222_v25  ;;  %v635_v20 = vcombine.low %v612_v10, %v627_v18  ;;  %v636_v21 = vcombine.high %v612_v10, %v627_v18  ;;  %876 = vrot.lane.b32.xlu0 %v725_v19, %s1072_s17  ;;  %v593_v25 = vrot.slane %v585_v36, %v1235_v33 }
 0x23b   :  { %v643_v49 = vrot.slane %v635_v20, %v1235_v33  ;;  %v651_v24 = vcombine.low %v619_v41, %v634_v42  ;;  %v652_v26 = vcombine.high %v619_v41, %v634_v42  ;;  %v650_v29 = vrot.slane %v636_v21, %v1235_v33 }
 0x23c   :  { %v603_v39 = vcombine.high %v593_v25, %v1064_v53 }
 0x23d   :  { %884 = vrot.lane.b32.xlu0 %v732_v22, %s1073_s18  ;;  %832 = vrot.lane.b32.xlu1 %v643_v49, %s1068_s13  ;;  %v667_v8 = vcombine.high %v643_v49, %v1064_v53  ;;  %v668_v47 = vcombine.high %v650_v29, %v1064_v53  ;;  %v659_v51 = vrot.slane %v651_v24, %v1235_v33 }
 0x23e   :  { %v666_v55 = vrot.slane %v652_v26, %v1235_v33 }
 0x23f   :  { %v669_v58 = vcombine.high %v659_v51, %v1064_v53 }
 0x240   :  { %v670_v59 = vcombine.high %v666_v55, %v1064_v53 }
 0x241   :  { %896 = vrot.lane.b32.xlu0 %v799_v28, %s1074_s19  ;;  %840 = vrot.lane.b32.xlu1 %v650_v29, %s1069_s14 }
 0x245   :  { %904 = vrot.lane.b32.xlu0 %v800_v31, %s1075_s20  ;;  %804 = vrot.lane.b32.xlu1 %v601_v2, %s1070_s15 }
 0x249   :  { %908 = vrot.lane.b32.xlu0 %v791_v37, %s1076_s21  ;;  %812 = vrot.lane.b32.xlu1 %v602_v11, %s1071_s16 }
 0x24d   :  { %916 = vrot.lane.b32.xlu0 %v798_v50, %s1077_s22  ;;  %816 = vrot.lane.b32.xlu1 %v593_v25, %s1072_s17 }
 0x251   :  { %880 = vrot.lane.b32.xlu0 %v735_v40, %s1078_s23  ;;  %824 = vrot.lane.b32.xlu1 %v600_v12, %s1073_s18 }
 0x255   :  { %888 = vrot.lane.b32.xlu0 %v736_v14, %s1079_s24  ;;  %836 = vrot.lane.b32.xlu1 %v667_v8, %s1074_s19 }
 0x259   :  { %912 = vrot.lane.b32.xlu0 %v801_v46, %s1080_s25  ;;  %844 = vrot.lane.b32.xlu1 %v668_v47, %s1075_s20 }
 0x25d   :  { %920 = vrot.lane.b32.xlu0 %v802_v48, %s1081_s26  ;;  %848 = vrot.lane.b32.xlu1 %v659_v51, %s1076_s21 }
 0x261   :  { %856 = vrot.lane.b32.xlu1 %v666_v55, %s1077_s22 }
 0x265   :  { %820 = vrot.lane.b32.xlu1 %v603_v39, %s1078_s23 }
 0x269   :  { %828 = vrot.lane.b32.xlu1 %v604_v56, %s1079_s24 }
 0x26d   :  { %852 = vrot.lane.b32.xlu1 %v669_v58, %s1080_s25 }
 0x26f   :  { %v869_v60 = vpop.permute.xlu0 %868 }
 0x271   :  { %860 = vrot.lane.b32.xlu1 %v670_v59, %s1081_s26 }
 0x283   :  { %v809_v52 = vpop.permute.xlu1 %808 }
 0x29b   :  { %v893_v62 = vpop.permute.xlu0 %892 }
 0x29f   :  { %v901_v63 = vpop.permute.xlu0 %900 }
 0x2a3   :  { %v865_v0 = vpop.permute.xlu0 %864 }
 0x2a4   :  { %v953_v53 = vsel %vm923_vm8, %v1333_v34, %v865_v0 }
 0x2a5   :  { %v954_v15 = vsel %vm925_vm9, %v953_v53, %v869_v60 }
 0x2a7   :  { %v873_v44 = vpop.permute.xlu0 %872 }
 0x2a8   :  { %v955_v16 = vsel %vm927_vm10, %v954_v15, %v873_v44 }
 0x2ab   :  { %v877_v33 = vpop.permute.xlu0 %876 }
 0x2ac   :  { %v956_v10 = vsel %vm929_vm11, %v955_v16, %v877_v33 }
 0x2af   :  { %v885_v35 = vpop.permute.xlu0 %884  ;;  %v833_v57 = vpop.permute.xlu1 %832 }
 0x2b3   :  { %v897_v61 = vpop.permute.xlu0 %896  ;;  %v841_v1 = vpop.permute.xlu1 %840 }
 0x2b7   :  { %v905_v5 = vpop.permute.xlu0 %904  ;;  %v805_v32 = vpop.permute.xlu1 %804 }
 0x2b8   :  { %v924_v22 = vsel %vm923_vm8, %v1368_v54, %v805_v32 }
 0x2b9   :  { %v926_v24 = vsel %vm925_vm9, %v924_v22, %v809_v52 }
 0x2bb   :  { %v909_v6 = vpop.permute.xlu0 %908  ;;  %v813_v7 = vpop.permute.xlu1 %812 }
 0x2bc   :  { %v928_v27 = vsel %vm927_vm10, %v926_v24, %v813_v7 }
 0x2bf   :  { %v917_v30 = vpop.permute.xlu0 %916  ;;  %v817_v9 = vpop.permute.xlu1 %816 }
 0x2c0   :  { %v930_v28 = vsel %vm929_vm11, %v928_v27, %v817_v9 }
 0x2c3   :  { %v881_v43 = vpop.permute.xlu0 %880  ;;  %v825_v13 = vpop.permute.xlu1 %824 }
 0x2c4   :  { %v957_v18 = vsel %vm931_vm12, %v956_v10, %v881_v43 }
 0x2c5   :  { %v958_v34 = vsel %vm933_vm13, %v957_v18, %v885_v35 }
 0x2c7   :  { %v837_v17 = vpop.permute.xlu1 %836  ;;  %v889_v19 = vpop.permute.xlu0 %888 }
 0x2c8   :  { %v959_v42 = vsel %vm935_vm14, %v958_v34, %v889_v19 }
 0x2c9   :  { %v960_v20 = vsel %vm937_vm15, %v959_v42, %v893_v62 }
 0x2ca   :  { %v961_v23 = vsel %vm939_vm0, %v960_v20, %v897_v61 }
 0x2cb   :  { %v845_v41 = vpop.permute.xlu1 %844  ;;  %v962_v26 = vsel %vm941_vm1, %v961_v23, %v901_v63  ;;  %v913_v31 = vpop.permute.xlu0 %912 }
 0x2cc   :  { %v963_v3 = vsel %vm943_vm2, %v962_v26, %v905_v5 }
 0x2cd   :  { %v964_v54 = vsel %vm945_vm3, %v963_v3, %v909_v6 }
 0x2ce   :  { %v965_v36 = vsel %vm947_vm4, %v964_v54, %v913_v31 }
 0x2cf   :  { %v849_v21 = vpop.permute.xlu1 %848  ;;  %v966_v12 = vsel %vm949_vm5, %v965_v36, %v917_v30  ;;  %v921_v14 = vpop.permute.xlu0 %920 }
 0x2d0   :  { %v967_v51 = vsel %vm951_vm6, %v966_v12, %v921_v14 }
 0x2d3   :  { %v857_v49 = vpop.permute.xlu1 %856 }
 0x2d7   :  { %v821_v29 = vpop.permute.xlu1 %820 }
 0x2d8   :  { %v932_v4 = vsel %vm931_vm12, %v930_v28, %v821_v29 }
 0x2d9   :  { %v934_v2 = vsel %vm933_vm13, %v932_v4, %v825_v13 }
 0x2db   :  { %v829_v45 = vpop.permute.xlu1 %828 }
 0x2dc   :  { %v936_v37 = vsel %vm935_vm14, %v934_v2, %v829_v45 }
 0x2dd   :  { %v938_v11 = vsel %vm937_vm15, %v936_v37, %v833_v57 }
 0x2de   :  { %v940_v50 = vsel %vm939_vm0, %v938_v11, %v837_v17 }
 0x2df   :  { %v942_v25 = vsel %vm941_vm1, %v940_v50, %v841_v1  ;;  %v853_v38 = vpop.permute.xlu1 %852 }
 0x2e0   :  { %v944_v40 = vsel %vm943_vm2, %v942_v25, %v845_v41 }
 0x2e1   :  { %v946_v8 = vsel %vm945_vm3, %v944_v40, %v849_v21 }
 0x2e2   :  { %v948_v46 = vsel %vm947_vm4, %v946_v8, %v853_v38 }
 0x2e3   :  { %v950_v47 = vsel %vm949_vm5, %v948_v46, %v857_v49  ;;  %v861_v48 = vpop.permute.xlu1 %860 }
 0x2e4   :  { %v952_v55 = vsel %vm951_vm6, %v950_v47, %v861_v48 }
 0x2e5   :  { %v970_v39 = vcombine.low %v952_v55, %v967_v51 }
 0x2e7   :  { %1002 = vst.sshfl [vmem:[#allocation4] sm:$0x33 pattern:$0x76325410] %v970_v39 }
 0x2e8   :  { %1050 = shalt.err (!%p1047_p4)
}
 0x2e9   :  { %s1051_s4 = scalar_lea.hbm %s1447_s2, 64 }
 0x2ea   :  { %p1052_p5 = scmp.ne.s32.totalorder %s1447_s2, %s1051_s4  ;;  %p1055_p6 = scmp.lt.u32.totalorder %s1051_s4, %s1447_s2 }
 0x2ec   :  { %p1057_p7 = pnand %p1055_p6, %p1052_p5 }
 0x2ee   :  { %1060 = shalt.err (!%p1057_p7)
}
 0x2ef   :  { %989 = dma.vmem_to_hbm [thread:$0]  %s987_s28, 64, %s1447_s2, [#allocation5]  }
 0x2f0   :  { %1061 = dma.done.wait [#allocation5], 64  }
 0x2f1   :  { %1062 = vsyncadd [#allocation5], 4294967232 }
 0x2f2   :  { %993 = vsyncpa [#allocation5], 1 }

</bundles_post_ra>
